<compile_context>
chip_gen: v6e
topology: v6e:2x2x1
jax: 0.10.0
libtpu: 0.0.40
codegen_flags: <defaults>
</compile_context>

<pallas_src>
import numpy as np
import jax
import jax.numpy as jnp
from jax.experimental import pallas as pl
from jax.experimental.pallas import tpu as pltpu

_ROWS_PER_CHUNK = 8  # sublane-granular output chunk; keeps accumulators in vregs


def _vmem_capacity_bytes():
    """Physical VMEM per TensorCore; falls back to the v7x-safe 64 MiB."""
    try:
        cap = getattr(pltpu.get_tpu_info(), "vmem_capacity_bytes", None)
        if cap:
            return int(cap)
    except Exception:
        pass
    return 64 * 1024 * 1024


def _pick_batch_tile(B, D, L, M, itemsize, budget_bytes):
    """Largest batch tile TB whose per-step working set (x tile + out tile,
    single-buffered) fits budget_bytes.  Tiled blocks must keep TB*D a
    multiple of 128 (BlockSpec lane rule); TB == B (full lane extent) is
    always legal."""
    def ws(tbd):
        return itemsize * tbd * (L + M)
    if ws(B * D) <= budget_bytes:
        return B
    for tb in range(B - 1, 0, -1):
        if B % tb == 0 and (tb * D) % 128 == 0 and ws(tb * D) <= budget_bytes:
            return tb
    # TODO(synk): no legal lane-dense tile fits the budget; fall back to the
    # whole batch and rely on the explicit vmem_limit (pipelining gets shallow).
    return B


def make_kernel(kernel_rows, L, M, TBD):
    """Kernel body; pooling structure is static per group, gated by pl.when."""
    G = len(kernel_rows)

    def kernel(x_ref, w_ref, o_ref):
        # x_ref: (L, TBD)  one (batch-tile, group) slab, B*D folded onto lanes
        # w_ref: (M, 1)    blend weight; lane broadcast happens per-op on VPU
        # o_ref: (M, TBD)
        g = pl.program_id(1)

        for gi in range(G):
            @pl.when(g == gi)
            def _(gi=gi):
                row = kernel_rows[gi]
                off = 0
                for k in row:
                    n = L // k
                    valid = max(0, min(n, M - off))       # static truncation
                    inv_k = jnp.float32(1.0 / k)
                    # Process output rows in sublane chunks so each chunk's
                    # sum/max reduction stays in registers (no VMEM spills).
                    for c0 in range(0, valid, _ROWS_PER_CHUNK):
                        rows = min(_ROWS_PER_CHUNK, valid - c0)
                        base = c0 * k
                        # k strided sublane reads feed BOTH branches:
                        #   sum_j x[base+j::k] and max_j x[base+j::k]
                        # (verify in the Mosaic dump that these lower to
                        #  strided vlds, incl. non-power-of-two k).
                        s0 = x_ref[pl.ds(base, rows, stride=k), :].astype(jnp.float32)
                        acc_sum = s0
                        acc_max = s0
                        for j in range(1, k):
                            sj = x_ref[pl.ds(base + j, rows, stride=k), :].astype(jnp.float32)
                            acc_sum = acc_sum + sj
                            acc_max = jnp.maximum(acc_max, sj)
                        # avg*w + max*(1-w) == max + w*(avg - max); the
                        # (rows, 1) w slice broadcasts across lanes per-op, so
                        # no (M, TBD) w / (1-w) tiles are ever materialized.
                        w_c = w_ref[pl.ds(off + c0, rows), :]
                        blended = acc_max + w_c * (acc_sum * inv_k - acc_max)
                        o_ref[pl.ds(off + c0, rows), :] = blended.astype(o_ref.dtype)
                    off += n
                total = min(off, M)
                if total < M:
                    # Both branches pad with zeros in the reference, so the
                    # blended padding is zero too (single static store).
                    o_ref[pl.ds(total, M - total), :] = jnp.zeros(
                        (M - total, TBD), o_ref.dtype)

    return kernel


def multi_scale_initdata_forward(x, w, kernel_rows, return_len, fold_output=False):
    """x: (B, L, G, D); w: (1, return_len, 1, 1).

    Returns (B, return_len, G, D) by default; with fold_output=True returns
    (G, return_len, B, D) and skips the output transpose HBM pass (preferred
    when the downstream consumer can take that layout)."""
    B, L, G, D = x.shape
    M = return_len
    assert G == len(kernel_rows) == 3
    for row in kernel_rows:
        assert len(row) > 0, "each group needs at least one pooling kernel"
        for k in row:
            assert 1 <= int(k) <= L, f"pooling kernel {k} invalid for L={L}"

    dtype = x.dtype                       # keep input dtype end-to-end (bf16 OK)
    itemsize = jnp.dtype(dtype).itemsize

    # Lane-dense fold (G, L, B*D); allow_input_fusion lets XLA fuse this
    # transpose into the kernel's input DMA instead of a separate HBM pass.
    x_fold = jnp.transpose(x, (2, 1, 0, 3)).reshape(G, L, B * D)
    w_2d = jnp.reshape(w, (M, 1)).astype(jnp.float32)

    cap = _vmem_capacity_bytes()
    TB = _pick_batch_tile(B, D, L, M, itemsize, budget_bytes=cap // 4)
    nb = B // TB
    TBD = TB * D

    # Honest VMEM accounting: double-buffered x + out tiles, the (lane-padded)
    # w tile, plus headroom for the chunk-sized accumulators / vregs.
    per_step = itemsize * TBD * (L + M) + 4 * M * 128
    vmem_limit = max(2 * per_step + (4 << 20), 16 << 20)
    vmem_limit = min(vmem_limit, int(cap * 0.9))
    vmem_limit = max(vmem_limit, 2 * per_step + (1 << 20))

    kernel = make_kernel(kernel_rows, L, M, TBD)

    # Advisory cost estimate (VPU adds+maxes over every element read, + combine).
    flops = int(2 * B * D * sum((L // k) * k + 3 * (L // k)
                                for row in kernel_rows for k in row))
    bytes_accessed = int(itemsize * (G * L * B * D + G * M * B * D) + 4 * M)

    out_fold = pl.pallas_call(
        kernel,
        out_shape=jax.ShapeDtypeStruct((G, M, B * D), dtype),
        grid_spec=pltpu.PrefetchScalarGridSpec(
            num_scalar_prefetch=0,
            grid=(nb, G),          # batch-tile axis first: balances the 2-TC split
            in_specs=[
                pl.BlockSpec((pl.Squeezed(), L, TBD), lambda b, g: (g, 0, b)),
                pl.BlockSpec((M, 1), lambda b, g: (0, 0)),
            ],
            out_specs=pl.BlockSpec((pl.Squeezed(), M, TBD), lambda b, g: (g, 0, b)),
        ),
        compiler_params=pltpu.CompilerParams(
            dimension_semantics=("parallel", "parallel"),
            vmem_limit_bytes=int(vmem_limit),
            allow_input_fusion=[True, False],
        ),
        cost_estimate=pl.CostEstimate(
            flops=flops, transcendentals=0, bytes_accessed=bytes_accessed),
    )(x_fold, w_2d)

    out = out_fold.reshape(G, M, B, D)
    if fold_output:
        return out
    # PyTorch output order (B, M, G, D).
    return jnp.transpose(out, (2, 1, 0, 3))


def reference_forward(x, w, kernel_rows, return_len):
    """Pure numpy reference mirroring the PyTorch module."""
    x = np.asarray(x, np.float32)
    w = np.asarray(w, np.float32)
    B, L, G, D = x.shape
    M = return_len

    def pool_group(xg, row, reduce_fn):
        pieces = []
        for k in row:
            n = L // k
            xr = xg[:, :n * k, :].reshape(B, n, k, D)
            pieces.append(reduce_fn(xr, axis=2))
        cat = np.concatenate(pieces, axis=1)
        if cat.shape[1] < M:
            pad = np.zeros((B, M - cat.shape[1], D), np.float32)
            cat = np.concatenate([cat, pad], axis=1)
        elif cat.shape[1] > M:
            cat = cat[:, :M, :]
        return cat

    avg_all, max_all = [], []
    for g in range(G):
        xg = x[:, :, g, :]
        avg_all.append(pool_group(xg, kernel_rows[g], np.mean)[:, :, None, :])
        max_all.append(pool_group(xg, kernel_rows[g], np.max)[:, :, None, :])
    avg_all = np.concatenate(avg_all, axis=2)   # (B, M, G, D)
    max_all = np.concatenate(max_all, axis=2)   # (B, M, G, D)
    return avg_all * w + max_all * (1.0 - w)


if __name__ == "__main__":
    # Small shapes consistent with the module: x is (B, L, 3, D).
    B, L, G, D = 2, 16, 3, 8
    return_len = 12
    # kernel_size_metix: 3 rows of pooling kernel sizes (a tensor in torch).
    kernel_size_metix = np.array([[2, 3], [4, 2], [3, 5]], dtype=np.int32)
    kernel_rows = [[int(k) for k in row] for row in kernel_size_metix]
    # Row pooled lengths: 8+5=13 (truncated), 4+8=12 (exact), 5+3=8 (zero padded).

    key = jax.random.PRNGKey(0)
    kx, kw = jax.random.split(key)
    x = jax.random.normal(kx, (B, L, G, D), dtype=jnp.float32)
    # Deterministic stand-in for the torch.rand(1, return_len, 1, 1) parameter.
    w = jax.random.uniform(kw, (1, return_len, 1, 1), dtype=jnp.float32)

    out = multi_scale_initdata_forward(x, w, kernel_rows, return_len)
    out = jax.block_until_ready(out)

    ref = reference_forward(np.asarray(x), np.asarray(w), kernel_rows, return_len)
    np.testing.assert_allclose(np.asarray(out), ref, rtol=1e-5, atol=1e-5)
    assert out.shape == (B, return_len, G, D)

    print("KERNEL_OK")
</pallas_src>

<mosaic_0001>
module attributes {stable_mosaic.version = 11 : i64} {
  func.func @kernel(%arg0: i32, %arg1: i32, %arg2: memref<1x16x16xf32, #tpu.memory_space<vmem>>, %arg3: memref<12x1xf32, #tpu.memory_space<vmem>>, %arg4: memref<1x12x16xf32, #tpu.memory_space<vmem>>) attributes {dimension_semantics = [#tpu.dimension_semantics<parallel>, #tpu.dimension_semantics<parallel>], iteration_bounds = array<i64: 1, 3>, scalar_prefetch = 0 : i64, scratch_operands = 0 : i64, tpu.core_type = #tpu.core_type<tc>, window_params = [{transform_indices = @transform_0, window_bounds = array<i64: 1, 16, 16>}, {pipeline_mode = #tpu.pipeline_mode<synchronous>, transform_indices = @transform_1, window_bounds = array<i64: 12, 1>}, {transform_indices = @transform_2, window_bounds = array<i64: 1, 12, 16>}]} {
    %c0_i32 = arith.constant 0 : i32
    %0 = arith.cmpi eq, %arg1, %c0_i32 : i32
    %1 = arith.extui %0 : i1 to i32
    %c0_i32_0 = arith.constant 0 : i32
    %2 = arith.cmpi ne, %1, %c0_i32_0 : i32
    scf.if %2 {
      %c0 = arith.constant 0 : index
      %c0_3 = arith.constant 0 : index
      %c0_4 = arith.constant 0 : index
      %9 = tpu.strided_load %arg2[%c0, %c0_3, %c0_4] {strides = array<i32: 1, 2, 1>} : memref<1x16x16xf32, #tpu.memory_space<vmem>>, vector<1x8x16xf32>
      %10 = vector.shape_cast %9 : vector<1x8x16xf32> to vector<8x16xf32>
      %c0_5 = arith.constant 0 : index
      %c1 = arith.constant 1 : index
      %c0_6 = arith.constant 0 : index
      %11 = tpu.strided_load %arg2[%c0_5, %c1, %c0_6] {strides = array<i32: 1, 2, 1>} : memref<1x16x16xf32, #tpu.memory_space<vmem>>, vector<1x8x16xf32>
      %12 = vector.shape_cast %11 : vector<1x8x16xf32> to vector<8x16xf32>
      %13 = arith.addf %10, %12 : vector<8x16xf32>
      %14 = arith.maximumf %10, %12 : vector<8x16xf32>
      %c0_7 = arith.constant 0 : index
      %c0_8 = arith.constant 0 : index
      %15 = vector.load %arg3[%c0_7, %c0_8] : memref<12x1xf32, #tpu.memory_space<vmem>>, vector<8x1xf32>
      %cst = arith.constant 5.000000e-01 : f32
      %16 = vector.broadcast %cst : f32 to vector<8x16xf32>
      %17 = arith.mulf %13, %16 : vector<8x16xf32>
      %18 = arith.subf %17, %14 : vector<8x16xf32>
      %19 = vector.broadcast %15 : vector<8x1xf32> to vector<8x16xf32>
      %20 = arith.mulf %19, %18 : vector<8x16xf32>
      %21 = arith.addf %14, %20 : vector<8x16xf32>
      %c0_9 = arith.constant 0 : index
      %c0_10 = arith.constant 0 : index
      %c0_11 = arith.constant 0 : index
      %22 = vector.load %arg4[%c0_9, %c0_10, %c0_11] : memref<1x12x16xf32, #tpu.memory_space<vmem>>, vector<1x8x16xf32>
      %23 = vector.shape_cast %22 : vector<1x8x16xf32> to vector<8x16xf32>
      %24 = vector.shape_cast %21 : vector<8x16xf32> to vector<1x8x16xf32>
      tpu.vector_store %arg4[%c0_9, %c0_10, %c0_11], %24 {strides = array<i32>} : memref<1x12x16xf32, #tpu.memory_space<vmem>>, vector<1x8x16xf32>,
      %c0_12 = arith.constant 0 : index
      %c0_13 = arith.constant 0 : index
      %c0_14 = arith.constant 0 : index
      %25 = tpu.strided_load %arg2[%c0_12, %c0_13, %c0_14] {strides = array<i32: 1, 3, 1>} : memref<1x16x16xf32, #tpu.memory_space<vmem>>, vector<1x4x16xf32>
      %26 = vector.shape_cast %25 : vector<1x4x16xf32> to vector<4x16xf32>
      %c0_15 = arith.constant 0 : index
      %c1_16 = arith.constant 1 : index
      %c0_17 = arith.constant 0 : index
      %27 = tpu.strided_load %arg2[%c0_15, %c1_16, %c0_17] {strides = array<i32: 1, 3, 1>} : memref<1x16x16xf32, #tpu.memory_space<vmem>>, vector<1x4x16xf32>
      %28 = vector.shape_cast %27 : vector<1x4x16xf32> to vector<4x16xf32>
      %29 = arith.addf %26, %28 : vector<4x16xf32>
      %30 = arith.maximumf %26, %28 : vector<4x16xf32>
      %c0_18 = arith.constant 0 : index
      %c2 = arith.constant 2 : index
      %c0_19 = arith.constant 0 : index
      %31 = tpu.strided_load %arg2[%c0_18, %c2, %c0_19] {strides = array<i32: 1, 3, 1>} : memref<1x16x16xf32, #tpu.memory_space<vmem>>, vector<1x4x16xf32>
      %32 = vector.shape_cast %31 : vector<1x4x16xf32> to vector<4x16xf32>
      %33 = arith.addf %29, %32 : vector<4x16xf32>
      %34 = arith.maximumf %30, %32 : vector<4x16xf32>
      %c8 = arith.constant 8 : index
      %c0_20 = arith.constant 0 : index
      %35 = vector.load %arg3[%c8, %c0_20] : memref<12x1xf32, #tpu.memory_space<vmem>>, vector<4x1xf32>
      %cst_21 = arith.constant 0.333333343 : f32
      %36 = vector.broadcast %cst_21 : f32 to vector<4x16xf32>
      %37 = arith.mulf %33, %36 : vector<4x16xf32>
      %38 = arith.subf %37, %34 : vector<4x16xf32>
      %39 = vector.broadcast %35 : vector<4x1xf32> to vector<4x16xf32>
      %40 = arith.mulf %39, %38 : vector<4x16xf32>
      %41 = arith.addf %34, %40 : vector<4x16xf32>
      %c0_22 = arith.constant 0 : index
      %c8_23 = arith.constant 8 : index
      %c0_24 = arith.constant 0 : index
      %42 = vector.load %arg4[%c0_22, %c8_23, %c0_24] : memref<1x12x16xf32, #tpu.memory_space<vmem>>, vector<1x4x16xf32>
      %43 = vector.shape_cast %42 : vector<1x4x16xf32> to vector<4x16xf32>
      %44 = vector.shape_cast %41 : vector<4x16xf32> to vector<1x4x16xf32>
      tpu.vector_store %arg4[%c0_22, %c8_23, %c0_24], %44 {strides = array<i32>} : memref<1x12x16xf32, #tpu.memory_space<vmem>>, vector<1x4x16xf32>,
    } else {
    }
    %c1_i32 = arith.constant 1 : i32
    %3 = arith.cmpi eq, %arg1, %c1_i32 : i32
    %4 = arith.extui %3 : i1 to i32
    %c0_i32_1 = arith.constant 0 : i32
    %5 = arith.cmpi ne, %4, %c0_i32_1 : i32
    scf.if %5 {
      %c0 = arith.constant 0 : index
      %c0_3 = arith.constant 0 : index
      %c0_4 = arith.constant 0 : index
      %9 = tpu.strided_load %arg2[%c0, %c0_3, %c0_4] {strides = array<i32: 1, 4, 1>} : memref<1x16x16xf32, #tpu.memory_space<vmem>>, vector<1x4x16xf32>
      %10 = vector.shape_cast %9 : vector<1x4x16xf32> to vector<4x16xf32>
      %c0_5 = arith.constant 0 : index
      %c1 = arith.constant 1 : index
      %c0_6 = arith.constant 0 : index
      %11 = tpu.strided_load %arg2[%c0_5, %c1, %c0_6] {strides = array<i32: 1, 4, 1>} : memref<1x16x16xf32, #tpu.memory_space<vmem>>, vector<1x4x16xf32>
      %12 = vector.shape_cast %11 : vector<1x4x16xf32> to vector<4x16xf32>
      %13 = arith.addf %10, %12 : vector<4x16xf32>
      %14 = arith.maximumf %10, %12 : vector<4x16xf32>
      %c0_7 = arith.constant 0 : index
      %c2 = arith.constant 2 : index
      %c0_8 = arith.constant 0 : index
      %15 = tpu.strided_load %arg2[%c0_7, %c2, %c0_8] {strides = array<i32: 1, 4, 1>} : memref<1x16x16xf32, #tpu.memory_space<vmem>>, vector<1x4x16xf32>
      %16 = vector.shape_cast %15 : vector<1x4x16xf32> to vector<4x16xf32>
      %17 = arith.addf %13, %16 : vector<4x16xf32>
      %18 = arith.maximumf %14, %16 : vector<4x16xf32>
      %c0_9 = arith.constant 0 : index
      %c3 = arith.constant 3 : index
      %c0_10 = arith.constant 0 : index
      %19 = tpu.strided_load %arg2[%c0_9, %c3, %c0_10] {strides = array<i32: 1, 4, 1>} : memref<1x16x16xf32, #tpu.memory_space<vmem>>, vector<1x4x16xf32>
      %20 = vector.shape_cast %19 : vector<1x4x16xf32> to vector<4x16xf32>
      %21 = arith.addf %17, %20 : vector<4x16xf32>
      %22 = arith.maximumf %18, %20 : vector<4x16xf32>
      %c0_11 = arith.constant 0 : index
      %c0_12 = arith.constant 0 : index
      %23 = vector.load %arg3[%c0_11, %c0_12] : memref<12x1xf32, #tpu.memory_space<vmem>>, vector<4x1xf32>
      %cst = arith.constant 2.500000e-01 : f32
      %24 = vector.broadcast %cst : f32 to vector<4x16xf32>
      %25 = arith.mulf %21, %24 : vector<4x16xf32>
      %26 = arith.subf %25, %22 : vector<4x16xf32>
      %27 = vector.broadcast %23 : vector<4x1xf32> to vector<4x16xf32>
      %28 = arith.mulf %27, %26 : vector<4x16xf32>
      %29 = arith.addf %22, %28 : vector<4x16xf32>
      %c0_13 = arith.constant 0 : index
      %c0_14 = arith.constant 0 : index
      %c0_15 = arith.constant 0 : index
      %30 = vector.load %arg4[%c0_13, %c0_14, %c0_15] : memref<1x12x16xf32, #tpu.memory_space<vmem>>, vector<1x4x16xf32>
      %31 = vector.shape_cast %30 : vector<1x4x16xf32> to vector<4x16xf32>
      %32 = vector.shape_cast %29 : vector<4x16xf32> to vector<1x4x16xf32>
      tpu.vector_store %arg4[%c0_13, %c0_14, %c0_15], %32 {strides = array<i32>} : memref<1x12x16xf32, #tpu.memory_space<vmem>>, vector<1x4x16xf32>,
      %c0_16 = arith.constant 0 : index
      %c0_17 = arith.constant 0 : index
      %c0_18 = arith.constant 0 : index
      %33 = tpu.strided_load %arg2[%c0_16, %c0_17, %c0_18] {strides = array<i32: 1, 2, 1>} : memref<1x16x16xf32, #tpu.memory_space<vmem>>, vector<1x8x16xf32>
      %34 = vector.shape_cast %33 : vector<1x8x16xf32> to vector<8x16xf32>
      %c0_19 = arith.constant 0 : index
      %c1_20 = arith.constant 1 : index
      %c0_21 = arith.constant 0 : index
      %35 = tpu.strided_load %arg2[%c0_19, %c1_20, %c0_21] {strides = array<i32: 1, 2, 1>} : memref<1x16x16xf32, #tpu.memory_space<vmem>>, vector<1x8x16xf32>
      %36 = vector.shape_cast %35 : vector<1x8x16xf32> to vector<8x16xf32>
      %37 = arith.addf %34, %36 : vector<8x16xf32>
      %38 = arith.maximumf %34, %36 : vector<8x16xf32>
      %c4 = arith.constant 4 : index
      %c0_22 = arith.constant 0 : index
      %39 = vector.load %arg3[%c4, %c0_22] : memref<12x1xf32, #tpu.memory_space<vmem>>, vector<8x1xf32>
      %cst_23 = arith.constant 5.000000e-01 : f32
      %40 = vector.broadcast %cst_23 : f32 to vector<8x16xf32>
      %41 = arith.mulf %37, %40 : vector<8x16xf32>
      %42 = arith.subf %41, %38 : vector<8x16xf32>
      %43 = vector.broadcast %39 : vector<8x1xf32> to vector<8x16xf32>
      %44 = arith.mulf %43, %42 : vector<8x16xf32>
      %45 = arith.addf %38, %44 : vector<8x16xf32>
      %c0_24 = arith.constant 0 : index
      %c4_25 = arith.constant 4 : index
      %c0_26 = arith.constant 0 : index
      %46 = vector.load %arg4[%c0_24, %c4_25, %c0_26] : memref<1x12x16xf32, #tpu.memory_space<vmem>>, vector<1x8x16xf32>
      %47 = vector.shape_cast %46 : vector<1x8x16xf32> to vector<8x16xf32>
      %48 = vector.shape_cast %45 : vector<8x16xf32> to vector<1x8x16xf32>
      tpu.vector_store %arg4[%c0_24, %c4_25, %c0_26], %48 {strides = array<i32>} : memref<1x12x16xf32, #tpu.memory_space<vmem>>, vector<1x8x16xf32>,
    } else {
    }
    %c2_i32 = arith.constant 2 : i32
    %6 = arith.cmpi eq, %arg1, %c2_i32 : i32
    %7 = arith.extui %6 : i1 to i32
    %c0_i32_2 = arith.constant 0 : i32
    %8 = arith.cmpi ne, %7, %c0_i32_2 : i32
    scf.if %8 {
      %c0 = arith.constant 0 : index
      %c0_3 = arith.constant 0 : index
      %c0_4 = arith.constant 0 : index
      %9 = tpu.strided_load %arg2[%c0, %c0_3, %c0_4] {strides = array<i32: 1, 3, 1>} : memref<1x16x16xf32, #tpu.memory_space<vmem>>, vector<1x5x16xf32>
      %10 = vector.shape_cast %9 : vector<1x5x16xf32> to vector<5x16xf32>
      %c0_5 = arith.constant 0 : index
      %c1 = arith.constant 1 : index
      %c0_6 = arith.constant 0 : index
      %11 = tpu.strided_load %arg2[%c0_5, %c1, %c0_6] {strides = array<i32: 1, 3, 1>} : memref<1x16x16xf32, #tpu.memory_space<vmem>>, vector<1x5x16xf32>
      %12 = vector.shape_cast %11 : vector<1x5x16xf32> to vector<5x16xf32>
      %13 = arith.addf %10, %12 : vector<5x16xf32>
      %14 = arith.maximumf %10, %12 : vector<5x16xf32>
      %c0_7 = arith.constant 0 : index
      %c2 = arith.constant 2 : index
      %c0_8 = arith.constant 0 : index
      %15 = tpu.strided_load %arg2[%c0_7, %c2, %c0_8] {strides = array<i32: 1, 3, 1>} : memref<1x16x16xf32, #tpu.memory_space<vmem>>, vector<1x5x16xf32>
      %16 = vector.shape_cast %15 : vector<1x5x16xf32> to vector<5x16xf32>
      %17 = arith.addf %13, %16 : vector<5x16xf32>
      %18 = arith.maximumf %14, %16 : vector<5x16xf32>
      %c0_9 = arith.constant 0 : index
      %c0_10 = arith.constant 0 : index
      %19 = vector.load %arg3[%c0_9, %c0_10] : memref<12x1xf32, #tpu.memory_space<vmem>>, vector<5x1xf32>
      %cst = arith.constant 0.333333343 : f32
      %20 = vector.broadcast %cst : f32 to vector<5x16xf32>
      %21 = arith.mulf %17, %20 : vector<5x16xf32>
      %22 = arith.subf %21, %18 : vector<5x16xf32>
      %23 = vector.broadcast %19 : vector<5x1xf32> to vector<5x16xf32>
      %24 = arith.mulf %23, %22 : vector<5x16xf32>
      %25 = arith.addf %18, %24 : vector<5x16xf32>
      %c0_11 = arith.constant 0 : index
      %c0_12 = arith.constant 0 : index
      %c0_13 = arith.constant 0 : index
      %26 = vector.load %arg4[%c0_11, %c0_12, %c0_13] : memref<1x12x16xf32, #tpu.memory_space<vmem>>, vector<1x5x16xf32>
      %27 = vector.shape_cast %26 : vector<1x5x16xf32> to vector<5x16xf32>
      %28 = vector.shape_cast %25 : vector<5x16xf32> to vector<1x5x16xf32>
      tpu.vector_store %arg4[%c0_11, %c0_12, %c0_13], %28 {strides = array<i32>} : memref<1x12x16xf32, #tpu.memory_space<vmem>>, vector<1x5x16xf32>,
      %c0_14 = arith.constant 0 : index
      %c0_15 = arith.constant 0 : index
      %c0_16 = arith.constant 0 : index
      %29 = tpu.strided_load %arg2[%c0_14, %c0_15, %c0_16] {strides = array<i32: 1, 5, 1>} : memref<1x16x16xf32, #tpu.memory_space<vmem>>, vector<1x3x16xf32>
      %30 = vector.shape_cast %29 : vector<1x3x16xf32> to vector<3x16xf32>
      %c0_17 = arith.constant 0 : index
      %c1_18 = arith.constant 1 : index
      %c0_19 = arith.constant 0 : index
      %31 = tpu.strided_load %arg2[%c0_17, %c1_18, %c0_19] {strides = array<i32: 1, 5, 1>} : memref<1x16x16xf32, #tpu.memory_space<vmem>>, vector<1x3x16xf32>
      %32 = vector.shape_cast %31 : vector<1x3x16xf32> to vector<3x16xf32>
      %33 = arith.addf %30, %32 : vector<3x16xf32>
      %34 = arith.maximumf %30, %32 : vector<3x16xf32>
      %c0_20 = arith.constant 0 : index
      %c2_21 = arith.constant 2 : index
      %c0_22 = arith.constant 0 : index
      %35 = tpu.strided_load %arg2[%c0_20, %c2_21, %c0_22] {strides = array<i32: 1, 5, 1>} : memref<1x16x16xf32, #tpu.memory_space<vmem>>, vector<1x3x16xf32>
      %36 = vector.shape_cast %35 : vector<1x3x16xf32> to vector<3x16xf32>
      %37 = arith.addf %33, %36 : vector<3x16xf32>
      %38 = arith.maximumf %34, %36 : vector<3x16xf32>
      %c0_23 = arith.constant 0 : index
      %c3 = arith.constant 3 : index
      %c0_24 = arith.constant 0 : index
      %39 = tpu.strided_load %arg2[%c0_23, %c3, %c0_24] {strides = array<i32: 1, 5, 1>} : memref<1x16x16xf32, #tpu.memory_space<vmem>>, vector<1x3x16xf32>
      %40 = vector.shape_cast %39 : vector<1x3x16xf32> to vector<3x16xf32>
      %41 = arith.addf %37, %40 : vector<3x16xf32>
      %42 = arith.maximumf %38, %40 : vector<3x16xf32>
      %c0_25 = arith.constant 0 : index
      %c4 = arith.constant 4 : index
      %c0_26 = arith.constant 0 : index
      %43 = tpu.strided_load %arg2[%c0_25, %c4, %c0_26] {strides = array<i32: 1, 5, 1>} : memref<1x16x16xf32, #tpu.memory_space<vmem>>, vector<1x3x16xf32>
      %44 = vector.shape_cast %43 : vector<1x3x16xf32> to vector<3x16xf32>
      %45 = arith.addf %41, %44 : vector<3x16xf32>
      %46 = arith.maximumf %42, %44 : vector<3x16xf32>
      %c5 = arith.constant 5 : index
      %c0_27 = arith.constant 0 : index
      %47 = vector.load %arg3[%c5, %c0_27] : memref<12x1xf32, #tpu.memory_space<vmem>>, vector<3x1xf32>
      %cst_28 = arith.constant 2.000000e-01 : f32
      %48 = vector.broadcast %cst_28 : f32 to vector<3x16xf32>
      %49 = arith.mulf %45, %48 : vector<3x16xf32>
      %50 = arith.subf %49, %46 : vector<3x16xf32>
      %51 = vector.broadcast %47 : vector<3x1xf32> to vector<3x16xf32>
      %52 = arith.mulf %51, %50 : vector<3x16xf32>
      %53 = arith.addf %46, %52 : vector<3x16xf32>
      %c0_29 = arith.constant 0 : index
      %c5_30 = arith.constant 5 : index
      %c0_31 = arith.constant 0 : index
      %54 = vector.load %arg4[%c0_29, %c5_30, %c0_31] : memref<1x12x16xf32, #tpu.memory_space<vmem>>, vector<1x3x16xf32>
      %55 = vector.shape_cast %54 : vector<1x3x16xf32> to vector<3x16xf32>
      %56 = vector.shape_cast %53 : vector<3x16xf32> to vector<1x3x16xf32>
      tpu.vector_store %arg4[%c0_29, %c5_30, %c0_31], %56 {strides = array<i32>} : memref<1x12x16xf32, #tpu.memory_space<vmem>>, vector<1x3x16xf32>,
      %cst_32 = arith.constant 0.000000e+00 : f32
      %57 = vector.broadcast %cst_32 : f32 to vector<4x16xf32>
      %c0_33 = arith.constant 0 : index
      %c8 = arith.constant 8 : index
      %c0_34 = arith.constant 0 : index
      %58 = vector.load %arg4[%c0_33, %c8, %c0_34] : memref<1x12x16xf32, #tpu.memory_space<vmem>>, vector<1x4x16xf32>
      %59 = vector.shape_cast %58 : vector<1x4x16xf32> to vector<4x16xf32>
      %60 = vector.shape_cast %57 : vector<4x16xf32> to vector<1x4x16xf32>
      tpu.vector_store %arg4[%c0_33, %c8, %c0_34], %60 {strides = array<i32>} : memref<1x12x16xf32, #tpu.memory_space<vmem>>, vector<1x4x16xf32>,
    } else {
    }
    return
  }
  func.func @transform_0(%arg0: i32, %arg1: i32) -> (i32, i32, i32) {
    %c0_i32 = arith.constant 0 : i32
    %c0_i32_0 = arith.constant 0 : i32
    return %arg1, %c0_i32, %arg0 : i32, i32, i32
  }
  func.func @transform_1(%arg0: i32, %arg1: i32) -> (i32, i32) {
    %c0_i32 = arith.constant 0 : i32
    %c0_i32_0 = arith.constant 0 : i32
    %c0_i32_1 = arith.constant 0 : i32
    return %c0_i32, %c0_i32_0 : i32, i32
  }
  func.func @transform_2(%arg0: i32, %arg1: i32) -> (i32, i32, i32) {
    %c0_i32 = arith.constant 0 : i32
    %c0_i32_0 = arith.constant 0 : i32
    return %arg1, %c0_i32, %arg0 : i32, i32, i32
  }
}

</mosaic_0001>

<bundles_post_ra>
// kernel: tpu_custom_call.1
= control target key start
LH: loop header
LB: loop body
LE: loop exit
PB: predicated region body
PF: predicated region fallthrough
CT: control target
= control target key end

     0   :  { %7 = vsyncpa [#allocation3], 0  ;;  %s856_s0 = inlined_call_operand.hbm [shape: f32[3,16,16], index: 0, kind: input, shape index: {}]   ;;  %s857_s1 = inlined_call_operand.vmem [shape: f32[12,1], index: 1, kind: input, shape index: {}]   ;;  %s858_s2 = inlined_call_operand.hbm [shape: f32[3,12,16], index: 2, kind: output, shape index: {}]  }
   0x1   :  { %9 = vsyncpa [#allocation3 + $0x1], 0 }
   0x2   :  { %10 = vsyncpa [#allocation4], 0 }
   0x3   :  { %12 = vsyncpa [#allocation4 + $0x1], 0  ;;  %s660_s9 = smov 0   ;;  %s662_s10 = smov 0  }
   0x4   :  { %s664_s11 = smov 0   ;;  %s666_s12 = smov 0  }
   0x5   :  { %s668_s13 = smov 0   ;;  %s670_s14 = smov 0  }
   0x6 LB: > { %s419_s15 = sadd.s32 4294967295, %s633_s14   ;;  %s420_s16 = sadd.s32 4294967294, %s633_s14   ;;  %s633_s14 = sphi %s670_s14, %s18_s14   ;;  %s629_s13 = sphi %s668_s13, %s868_s13   ;;  %s625_s12 = sphi %s666_s12, %s867_s12   ;;  %s621_s11 = sphi %s664_s11, %s866_s11   ;;  %s617_s10 = sphi %s662_s10, %s865_s10   ;;  %s613_s9 = sphi %s660_s9, %s864_s9  }
   0x7   : > { %s27_s17 = sadd.s32 1, %s629_s13  ;;  %s39_s18 = sadd.s32 1, %s621_s11 }
   0x8   : > { %p28_p0 = scmp.ge.s32.totalorder %s27_s17, 3  ;;  %p46_p1 = scmp.ne.s32.totalorder %s621_s11, %s617_s10 }
   0x9   : > { %p47_p2 = scmp.eq.s32.totalorder %s633_s14, 0  ;;  %p52_p3 = scmp.ne.s32.totalorder %s617_s10, %s613_s9 }
   0xa   : > { %s870_s17 = smov (%p28_p0, %s27_s17), 0  ;;  %p53_p5 = scmp.eq.s32.totalorder %s419_s15, 0 }
   0xb   : > { %p701_p4 = por %p47_p2, %p46_p1  ;;  %s34_s20 = ssub.s32 %s629_s13, %s870_s17 }
   0xc   : > { %p99_p6 = scmp.eq.s32.totalorder %s419_s15, 2  ;;  %p37_p7 = scmp.eq.s32.totalorder %s34_s20, 0 }
   0xd   : > { %p707_p8 = por %p53_p5, %p52_p3  ;;  %p105_p10 = scmp.eq.s32.totalorder %s420_s16, 2 }
   0xe   : > { %p711_p9 = por %p99_p6, %p46_p1  ;;  %p464_p12 = scmp.lt.s32.totalorder %s633_s14, 3 }
   0xf   : > { %s716_s23 = scalar_select %p37_p7, %s621_s11, %s39_s18  }
  0x10   : > { %p718_p11 = por %p105_p10, %p52_p3  ;;  %s128_s25 = sand.u32 1, %s621_s11  }
  0x11   : > { %s423_s26 = sshll.u32 %s128_s25, 4  ;;  %s450_s27 = sshll.u32 %s629_s13, 8 }
  0x12   : > { %s139_s30 = scalar_lea.hbm %s856_s0, %s450_s27  ;;  %s132_s3 = scalar_lea.vmem [#allocation2], %s423_s26 }
  0x13   : > { %s140_s4 = sshll.u32 %s132_s3, 4  ;;  %p730_p13 = pnand %p464_p12, %p701_p4  ;;  %s141_s4 = int_to_ptr.vmem [resolvable:$true] %s140_s4 }
  0x14   : > { %p426_p0 = scmp.ge.s32.totalorder %s633_s14, 1  ;;  %s129_s6 = scalar_lea.sflag [#allocation3], %s128_s25 }
  0x15   : > { %p527_p1 = pneg %p730_p13  ;;  %s538_s7 = scalar_lea.vmem %s141_s4, 256 }
  0x16   : > { %p539_p2 = scmp.ne.s32.totalorder %s141_s4, %s538_s7  ;;  %s635_s8 = smov [#allocation2]  }
  0x17   : > { %s543_s15 = sshll.u32 %s635_s8, 4  ;;  %s544_s15 = int_to_ptr.vmem [resolvable:$false] %s543_s15 }
  0x18   : > { %p541_p3 = pnand %p539_p2, %p527_p1  ;;  %s545_s16 = scalar_lea.vmem %s544_s15, 512 }
  0x19   : > { %p546_p6 = scmp.lt.s32.totalorder %s141_s4, %s544_s15  ;;  %p547_p7 = scmp.lt.s32.totalorder %s545_s16, %s538_s7 }
  0x1a   : > { %p542_p5 = pneg %p541_p3 }
  0x1b   : > { %p548_p10 = por %p547_p7, %p546_p6 }
  0x1d   : > { %p549_p4 = pnand %p548_p10, %p542_p5 }
  0x1f   : > { %552 = shalt.err (!%p549_p4)
}
  0x20   : > { %s636_s18 = smov 128   ;;  %s637_s19 = smov 8  }
  0x21   : > { %459 = dma.hbm_to_vmem [thread:$0]  (!%p730_p13), %s139_s30, 256, %s141_s4, %s129_s6, %s636_s18, %s636_s18, %s637_s19  }
  0x22   : > { %p148_p12 = scmp.lt.s32.totalorder %s633_s14, 4 }
  0x24   : > { %p149_p1 = pnand %p426_p0, %p148_p12 }
  0x25   : > { %s743_s20 = sand.u32 (!%p149_p1), 1, %s617_s10  }
  0x26   : > { %152 = sbr.rel (%p149_p1) target bundleno = 494 (0x1ee), region = 28  ;;  %s427_s25 = sshll.u32 (!%p149_p1), %s743_s20, 4 }
  0x27   : > { %s155_s26 = scalar_lea.sflag (!%p149_p1), [#allocation3], %s743_s20  ;;  %s747_s27 = scalar_lea.vmem (!%p149_p1), [#allocation2], %s427_s25 }
  0x2b   : > { %604 = dma.done.wait (%p707_p8), %s155_s26, 256  }
  0x2c   : > { %606 = vsyncadd (%p707_p8), %s155_s26, 4294967040  ;;  %s753_s28 = scalar_lea.vmem [#allocation5], %s427_s25  ;;  %p429_p13 = scmp.ne.s32.totalorder %s625_s12, 0 }
  0x2e   : > { %182 = sbr.rel (%p429_p13) target bundleno = 186 (0xba), region = 36 }
  0x33   : > { %v188_v0 = vld [vmem:[%s857_s1] sm:$0xff]  ;;  %v638_v1 = vmov 0   ;;  %v208_v2 = vld [vmem:[%s857_s1 + $0x8] sm:$0xf]  ;;  %vm198_vm0 = vcmask 130048   ;;  %vm218_vm1 = vcmask 125952  }
  0x34   : > { %522 = vset.pattern.permute.xlu0 %v638_v1  ;;  %v183_v3 = vld [vmem:[%s747_s27] ss:$2 sm:$0xff]  ;;  %v430_v4 = vld [vmem:[%s747_s27 + $0x1] ss:$2 sm:$0xff] }
  0x35   : > { %193 = vperm.xlu0 %522, %v188_v0   ;;  %v200_v5 = vld [vmem:[%s747_s27] ss:$3 sm:$0xf]  ;;  %v431_v6 = vld [vmem:[%s747_s27 + $0x1] ss:$3 sm:$0xf]  ;;  %v186_v7 = vadd.f32 %v430_v4, %v183_v3  ;;  %v187_v10 = vmax.f32 %v183_v3, %v430_v4 }
  0x36   : > { %v202_v8 = vadd.f32 %v431_v6, %v200_v5  ;;  %v432_v9 = vld [vmem:[%s747_s27 + $0x2] ss:$3 sm:$0xf]  ;;  %v203_v12 = vmax.f32 %v200_v5, %v431_v6 }
  0x37   : > { %v189_v11 = vmul.f32 0.5, %v186_v7 }
  0x38   : > { %v206_v13 = vadd.f32 %v432_v9, %v202_v8  ;;  %v207_v15 = vmax.f32 %v203_v12, %v432_v9 }
  0x39   : > { %213 = vperm.xlu0 %522, %v208_v2   ;;  %v190_v14 = vsub.f32 %v189_v11, %v187_v10 }
  0x3a   : > { %v209_v16 = vmul.f32 0.33333334, %v206_v13 }
  0x3c   : > { %v210_v19 = vsub.f32 %v209_v16, %v207_v15 }
  0xb0   : > { %v194_v17 = vpop.permute.xlu0 %193 }
  0xb1   : > { %v196_v18 = vmul.f32 %v194_v17, %v190_v14 }
  0xb3   : > { %v197_v20 = vadd.f32 %v196_v18, %v187_v10 }
  0xb4   : > { %v214_v21 = vpop.permute.xlu0 %213 }
  0xb5   : > { %199 = vst.msk [vmem:[%s753_s28] sm:$0xff] %vm198_vm0, %v197_v20  ;;  %v216_v22 = vmul.f32 %v214_v21, %v210_v19 }
  0xb7   : > { %v217_v23 = vadd.f32 %v216_v22, %v207_v15 }
  0xb9   : > { %219 = vst.msk [vmem:[%s753_s28 + $0x8] sm:$0xf] %vm218_vm1, %v217_v23 }
  0xba PF: > { %p433_p8 = scmp.ne.s32.totalorder %s625_s12, 1 }
  0xbc   : > { %223 = sbr.rel (%p433_p8) target bundleno = 328 (0x148), region = 40 }
  0xc1   : > { %v237_v24 = vld [vmem:[%s857_s1] sm:$0xf]  ;;  %v639_v25 = vmov 0   ;;  %v253_v26 = vld [vmem:[%s857_s1 + $0x4] sm:$0xff]  ;;  %vm247_vm2 = vcmask 125952   ;;  %vm263_vm3 = vcmask 130048  }
  0xc2   : > { %523 = vset.pattern.permute.xlu0 %v639_v25  ;;  %v224_v27 = vld [vmem:[%s747_s27] ss:$4 sm:$0xf]  ;;  %v434_v28 = vld [vmem:[%s747_s27 + $0x1] ss:$4 sm:$0xf] }
  0xc3   : > { %242 = vperm.xlu0 %523, %v237_v24   ;;  %v227_v29 = vadd.f32 %v434_v28, %v224_v27  ;;  %v435_v30 = vld [vmem:[%s747_s27 + $0x2] ss:$4 sm:$0xf]  ;;  %v228_v31 = vmax.f32 %v224_v27, %v434_v28  ;;  %v436_v33 = vld [vmem:[%s747_s27 + $0x3] ss:$4 sm:$0xf] }
  0xc4   : > { %v249_v36 = vld [vmem:[%s747_s27] ss:$2 sm:$0xff]  ;;  %v437_v37 = vld [vmem:[%s747_s27 + $0x1] ss:$2 sm:$0xff] }
  0xc5   : > { %v231_v32 = vadd.f32 %v435_v30, %v227_v29  ;;  %v232_v34 = vmax.f32 %v228_v31, %v435_v30  ;;  %v251_v40 = vadd.f32 %v437_v37, %v249_v36  ;;  %v252_v42 = vmax.f32 %v249_v36, %v437_v37 }
  0xc7   : > { %258 = vperm.xlu0 %523, %v253_v26   ;;  %v235_v35 = vadd.f32 %v436_v33, %v231_v32  ;;  %v236_v38 = vmax.f32 %v232_v34, %v436_v33  ;;  %v254_v43 = vmul.f32 0.5, %v251_v40 }
  0xc9   : > { %v238_v39 = vmul.f32 0.25, %v235_v35  ;;  %v255_v46 = vsub.f32 %v254_v43, %v252_v42 }
  0xcb   : > { %v239_v41 = vsub.f32 %v238_v39, %v236_v38 }
 0x13e   : > { %v243_v44 = vpop.permute.xlu0 %242 }
 0x13f   : > { %v245_v45 = vmul.f32 %v243_v44, %v239_v41 }
 0x141   : > { %v246_v47 = vadd.f32 %v245_v45, %v236_v38 }
 0x142   : > { %v259_v48 = vpop.permute.xlu0 %258 }
 0x143   : > { %248 = vst.msk [vmem:[%s753_s28] sm:$0xf] %vm247_vm2, %v246_v47  ;;  %v261_v49 = vmul.f32 %v259_v48, %v255_v46 }
 0x145   : > { %v262_v50 = vadd.f32 %v261_v49, %v252_v42 }
 0x147   : > { %264 = vst.msk [vmem:[%s753_s28 + $0x4] sm:$0xff] %vm263_vm3, %v262_v50 }
 0x148 PF: > { %p438_p0 = scmp.ne.s32.totalorder %s625_s12, 2 }
 0x14a   : > { %268 = sbr.rel (%p438_p0) target bundleno = 470 (0x1d6), region = 44 }
 0x14f   : > { %v278_v51 = vld [vmem:[%s857_s1] sm:$0x1f]  ;;  %v640_v52 = vmov 0   ;;  %v305_v53 = vld [vmem:[%s857_s1 + $0x5] sm:$0x7]  ;;  %vm317_vm4 = vcmask 125952  }
 0x150   : > { %524 = vset.pattern.permute.xlu0 %v640_v52  ;;  %v641_v54 = vmov 0.0   ;;  %v290_v55 = vld [vmem:[%s747_s27] ss:$5 sm:$0x7]  ;;  %vm288_vm5 = vcmask 126976   ;;  %vm315_vm6 = vcmask 124928  }
 0x151   : > { %283 = vperm.xlu0 %524, %v278_v51   ;;  %318 = vst.msk [vmem:[%s753_s28 + $0x8] sm:$0xf] %vm317_vm4, %v641_v54  ;;  %v441_v56 = vld [vmem:[%s747_s27 + $0x1] ss:$5 sm:$0x7] }
 0x152   : > { %v269_v57 = vld [vmem:[%s747_s27] ss:$3 sm:$0x1f]  ;;  %v292_v58 = vadd.f32 %v441_v56, %v290_v55  ;;  %v439_v59 = vld [vmem:[%s747_s27 + $0x1] ss:$3 sm:$0x1f]  ;;  %v293_v62 = vmax.f32 %v290_v55, %v441_v56 }
 0x153   : > { %v442_v60 = vld [vmem:[%s747_s27 + $0x2] ss:$5 sm:$0x7]  ;;  %v272_v61 = vadd.f32 %v439_v59, %v269_v57  ;;  %v443_v1 = vld [vmem:[%s747_s27 + $0x3] ss:$5 sm:$0x7]  ;;  %v273_v2 = vmax.f32 %v269_v57, %v439_v59 }
 0x154   : > { %v295_v63 = vadd.f32 %v442_v60, %v292_v58  ;;  %v440_v0 = vld [vmem:[%s747_s27 + $0x2] ss:$3 sm:$0x1f]  ;;  %v296_v4 = vmax.f32 %v293_v62, %v442_v60 }
 0x155   : > { %310 = vperm.xlu0 %524, %v305_v53   ;;  %v276_v3 = vadd.f32 %v440_v0, %v272_v61  ;;  %v444_v6 = vld [vmem:[%s747_s27 + $0x4] ss:$5 sm:$0x7]  ;;  %v277_v7 = vmax.f32 %v273_v2, %v440_v0 }
 0x156   : > { %v299_v5 = vadd.f32 %v443_v1, %v295_v63  ;;  %v300_v9 = vmax.f32 %v296_v4, %v443_v1 }
 0x157   : > { %v279_v8 = vmul.f32 0.33333334, %v276_v3 }
 0x158   : > { %v303_v10 = vadd.f32 %v444_v6, %v299_v5  ;;  %v304_v12 = vmax.f32 %v300_v9, %v444_v6 }
 0x159   : > { %v280_v11 = vsub.f32 %v279_v8, %v277_v7 }
 0x15a   : > { %v306_v13 = vmul.f32 0.2, %v303_v10 }
 0x15c   : > { %v307_v16 = vsub.f32 %v306_v13, %v304_v12 }
 0x1cc   : > { %v284_v14 = vpop.permute.xlu0 %283 }
 0x1cd   : > { %v286_v15 = vmul.f32 %v284_v14, %v280_v11 }
 0x1cf   : > { %v287_v17 = vadd.f32 %v286_v15, %v277_v7 }
 0x1d0   : > { %v311_v18 = vpop.permute.xlu0 %310 }
 0x1d1   : > { %289 = vst.msk [vmem:[%s753_s28] sm:$0x1f] %vm288_vm5, %v287_v17  ;;  %v313_v19 = vmul.f32 %v311_v18, %v307_v16 }
 0x1d3   : > { %v314_v20 = vadd.f32 %v313_v19, %v304_v12 }
 0x1d5   : > { %316 = vst.msk [vmem:[%s753_s28 + $0x5] sm:$0x7] %vm315_vm6, %v314_v20 }
 0x1d6 PF: > { %s451_s19 = sshll.u32 %s625_s12, 8  ;;  %s334_s29 = sshll.u32 %s753_s28, 4  ;;  %s809_s29 = int_to_ptr.vmem [resolvable:$true] %s334_s29 }
 0x1d7   : > { %s806_s27 = scalar_lea.hbm %s858_s2, %s451_s19  ;;  %s320_s30 = scalar_lea.sflag [#allocation4], %s743_s20 }
 0x1d8   : > { %s553_s3 = scalar_lea.vmem %s809_s29, 256  ;;  %s642_s21 = smov [#allocation5]  }
 0x1d9   : > { %p554_p2 = scmp.ne.s32.totalorder %s809_s29, %s553_s3  ;;  %s557_s4 = sshll.u32 %s642_s21, 4  ;;  %s558_s4 = int_to_ptr.vmem [resolvable:$false] %s557_s4 }
 0x1da   : > { %s559_s12 = scalar_lea.vmem %s558_s4, 512  ;;  %p560_p6 = scmp.lt.s32.totalorder %s809_s29, %s558_s4 }
 0x1db   : > { %p555_p3 = pnand %p554_p2, %p711_p9  ;;  %p561_p7 = scmp.lt.s32.totalorder %s559_s12, %s553_s3 }
 0x1dd   : > { %p556_p5 = pneg %p555_p3  ;;  %p562_p10 = por %p561_p7, %p560_p6 }
 0x1df   : > { %p563_p4 = pnand %p562_p10, %p556_p5 }
 0x1e1   : > { %566 = shalt.err (!%p563_p4)
}
 0x1e2   : > { %s567_s28 = scalar_lea.hbm %s806_s27, 256  ;;  %s571_s7 = scalar_lea.hbm %s858_s2, 768 }
 0x1e3   : > { %p568_p12 = scmp.ne.s32.totalorder %s806_s27, %s567_s28  ;;  %p572_p8 = scmp.lt.s32.totalorder %s806_s27, %s858_s2 }
 0x1e4   : > { %p573_p0 = scmp.lt.s32.totalorder %s571_s7, %s567_s28 }
 0x1e5   : > { %p569_p1 = pnand %p568_p12, %p711_p9 }
 0x1e6   : > { %p574_p2 = por %p573_p0, %p572_p8 }
 0x1e7   : > { %p570_p13 = pneg %p569_p1 }
 0x1e9   : > { %p575_p3 = pnand %p574_p2, %p570_p13 }
 0x1eb   : > { %578 = shalt.err (!%p575_p3)
}
 0x1ec   : > { %s643_s16 = smov 128   ;;  %s644_s18 = smov 8  }
 0x1ed   : > { %454 = dma.vmem_to_hbm [thread:$0]  (%p711_p9), %s809_s29, 256, %s806_s27, %s320_s30, %s643_s16, %s643_s16, %s644_s18  }
 0x1ee PF: > { %p465_p5 = scmp.ge.s32.totalorder %s633_s14, 2  ;;  %s349_s19 = sand.u32 1, %s613_s9  }
 0x1ef   : > { %s350_s25 = scalar_lea.sflag [#allocation4], %s349_s19 }
 0x1f0   : > { %p461_p6 = pnand %p465_p5, %p718_p11 }
 0x1f2   : > { %p462_p7 = pneg %p461_p6 }
 0x1f4   : > { %608 = dma.done.wait (%p462_p7), %s350_s25, 256  }
 0x1f5   : > { %610 = vsyncadd (%p462_p7), %s350_s25, 4294967040  ;;  %s18_s14 = sadd.s32 1, %s633_s14   ;;  %s864_s9 = smov %s617_s10 }
 0x1f6   : > { %p15_p10 = scmp.ge.s32.totalorder %s18_s14, 5   ;;  %s865_s10 = smov %s621_s11 }
 0x1f7   : > { %s866_s11 = smov %s716_s23  ;;  %s867_s12 = smov %s629_s13 }
 0x1f8   : > { %s868_s13 = smov %s870_s17  ;;  %17 = sbr.rel (!%p15_p10) target bundleno = 6 (0x6), region = 94 }
 0x1fd   :  { %355 = vsyncpa [#allocation3], 1 }
 0x1fe   :  { %357 = vsyncpa [#allocation3 + $0x1], 1 }
 0x1ff   :  { %358 = vsyncpa [#allocation4], 1 }
 0x200   :  { %360 = vsyncpa [#allocation4 + $0x1], 1 }

</bundles_post_ra>
